<compile_context>
chip_gen: v6e
topology: v6e:2x2x1
jax: 0.10.0
libtpu: 0.0.40
codegen_flags: <defaults>
</compile_context>

<pallas_src>
import functools

import jax
import jax.numpy as jnp
from jax.experimental import pallas as pl
from jax.experimental.pallas import tpu as pltpu


def _mha_kernel(x_ref, y_ref, wq_ref, bq_ref, wk_ref, bk_ref, wv_ref, bv_ref,
                wp_ref, bp_ref, out_ref, attn_ref, *, use_bf16_matmuls):
    # Per grid step (one head):
    #   x_ref: (tq, c)   y_ref: (m, d)
    #   wq_ref: (c, hd)  wk_ref/wv_ref: (d, hd)  wp_ref: (hd, c)
    #   bq_ref/bk_ref/bv_ref: (1, hd)  bp_ref: (1, c)
    #   out_ref: (tq, c)  -- accumulated across the head grid axis
    #   attn_ref: (tq, m) -- this head's probabilities, lane-dense in m
    head = pl.program_id(2)

    x = x_ref[...]
    y = y_ref[...]

    # Projections: full-lane-width 2-D MXU dots (contraction depth c / d).
    # The softmax scale is already folded into wq/bq on the host.
    q = jnp.dot(x, wq_ref[...], preferred_element_type=jnp.float32) + bq_ref[...]
    k = jnp.dot(y, wk_ref[...], preferred_element_type=jnp.float32) + bk_ref[...]
    v = jnp.dot(y, wv_ref[...], preferred_element_type=jnp.float32) + bv_ref[...]

    if use_bf16_matmuls:
        q = q.astype(jnp.bfloat16)
        k = k.astype(jnp.bfloat16)

    # scores[n, m'] = sum_d q[n, d] * k[m', d]  (NT dims -> no K^T in VMEM).
    s = jax.lax.dot_general(q, k, (((1,), (1,)), ((), ())),
                            preferred_element_type=jnp.float32)     # (tq, m)

    # Row softmax over keys (torch softmax(dim=2)); exact normalization since
    # the probabilities are a returned output of the module.
    s_max = jnp.max(s, axis=-1, keepdims=True)
    p = jnp.exp(s - s_max)
    p = p * (1.0 / jnp.sum(p, axis=-1, keepdims=True))

    attn_ref[...] = p.astype(attn_ref.dtype)    # lane-dense (tq, m) store

    pv_p = p.astype(jnp.bfloat16) if use_bf16_matmuls else p
    pv_v = v.astype(jnp.bfloat16) if use_bf16_matmuls else v
    o = jnp.dot(pv_p, pv_v, preferred_element_type=jnp.float32)     # (tq, hd)

    # This head's contribution to the output projection; accumulate directly
    # in the revisited output block (no (H, tq, c) intermediate).
    contrib = jnp.dot(o, wp_ref[...], preferred_element_type=jnp.float32)   # (tq, c)

    @pl.when(head == 0)
    def _init():
        out_ref[...] = contrib + bp_ref[...]

    @pl.when(head > 0)
    def _accumulate():
        out_ref[...] = out_ref[...] + contrib


def _vmem_bytes_estimate(block_q, m, dim_self, dim_ref, head_dim):
    """Rough f32 VMEM footprint of one grid step (pipeline buffers + temps)."""
    c, d, hd = dim_self, dim_ref, head_dim
    blocks = 2 * (block_q * c            # x
                  + m * d                # y
                  + block_q * c          # out (revisited accumulator)
                  + block_q * m)         # attn
    weights = 2 * (c * hd + 2 * d * hd + hd * c + 3 * hd + c)   # per-head
    interm = (block_q * hd + 2 * m * hd        # q, k, v
              + 3 * block_q * m                # scores / exp / probs
              + block_q * hd + block_q * c)    # o, per-head projection
    return 4 * (blocks + weights + interm)


def _vmem_budget_bytes():
    """~75% of this generation's physical VMEM (v7x ~48 MiB, v5e/v6e ~96 MiB)."""
    try:
        capacity = pltpu.get_tpu_info().vmem_capacity_bytes
    except Exception:                     # conservative fallback = v7x per-core
        capacity = 64 * 1024 * 1024
    return int(capacity) * 3 // 4


def _pick_block_q(batch, n, m, dim_self, dim_ref, head_dim, budget_bytes):
    """Largest query tile fitting the VMEM budget; keep >=2 parallel grid steps."""
    cands = sorted({bq for bq in (2048, 1024, 512, 256, 128, 64, 32, 16, 8)
                    if n % bq == 0} | {n}, reverse=True)
    fitting = [bq for bq in cands
               if _vmem_bytes_estimate(bq, m, dim_self, dim_ref, head_dim)
               <= budget_bytes] or [cands[-1]]
    for bq in fitting:                     # descending; first with >=2 steps
        if batch * (n // bq) >= 2:         # keep both v7x TensorCores busy
            return bq
    return fitting[0]


def multi_head_attention(x, y, params, num_heads, *,
                         lane_dense_attention=True,
                         attention_dtype=None,
                         use_bf16_matmuls=False):
    """Fused MHA forward (mask=None, dropout=0.0).  x: (b,n,c), y: (b,m,d).

    Returns (out, attention):
      out: (b, n, dim_self) float32.
      attention: (b, num_heads, n, m) when lane_dense_attention=True (default,
        lane-dense store, no extra HBM relayout) or PyTorch-matching
        (b, n, m, num_heads) when False (adds a full transpose of the largest
        tensor).  attention_dtype=bf16 halves the dominant HBM write; the
        in-kernel softmax math stays float32.
    """
    b, n, c = x.shape
    _, m, d = y.shape
    if c % num_heads:
        raise ValueError("dim_self must be divisible by num_heads")
    head_dim = c // num_heads
    scale = head_dim ** (-0.5)
    attention_dtype = jnp.float32 if attention_dtype is None else attention_dtype

    wq, bq, wkv, bkv, wp, bp = params

    # --- one-time host-side parameter prep: head-major (H, in, hd) blocks ---
    wq3 = jnp.transpose((wq * scale).reshape(c, num_heads, head_dim), (1, 0, 2))
    bq3 = (bq * scale).reshape(num_heads, 1, head_dim)
    wk3 = jnp.transpose(wkv[:, :c].reshape(d, num_heads, head_dim), (1, 0, 2))
    wv3 = jnp.transpose(wkv[:, c:].reshape(d, num_heads, head_dim), (1, 0, 2))
    bk3 = bkv[:c].reshape(num_heads, 1, head_dim)
    bv3 = bkv[c:].reshape(num_heads, 1, head_dim)
    wp3 = wp.reshape(num_heads, head_dim, c)      # rows of wp are (h, hd) ordered
    bp2 = bp.reshape(1, c)

    budget = _vmem_budget_bytes()
    block_q = _pick_block_q(b, n, m, c, d, head_dim, budget)
    grid = (b, n // block_q, num_heads)

    est = _vmem_bytes_estimate(block_q, m, c, d, head_dim)
    vmem_limit = int(min(budget, max(2 * est, 32 * 1024 * 1024)))

    kernel = functools.partial(_mha_kernel, use_bf16_matmuls=use_bf16_matmuls)

    out, attn_bhnm = pl.pallas_call(
        kernel,
        out_shape=(
            jax.ShapeDtypeStruct((b, n, c), jnp.float32),
            jax.ShapeDtypeStruct((b, num_heads, n, m), attention_dtype),
        ),
        grid_spec=pltpu.PrefetchScalarGridSpec(
            num_scalar_prefetch=0,
            grid=grid,
            in_specs=[
                pl.BlockSpec((pl.Squeezed(), block_q, c), lambda bi, qi, hi: (bi, qi, 0)),   # x
                pl.BlockSpec((pl.Squeezed(), m, d), lambda bi, qi, hi: (bi, 0, 0)),          # y
                pl.BlockSpec((pl.Squeezed(), c, head_dim), lambda bi, qi, hi: (hi, 0, 0)),   # wq3
                pl.BlockSpec((pl.Squeezed(), 1, head_dim), lambda bi, qi, hi: (hi, 0, 0)),   # bq3
                pl.BlockSpec((pl.Squeezed(), d, head_dim), lambda bi, qi, hi: (hi, 0, 0)),   # wk3
                pl.BlockSpec((pl.Squeezed(), 1, head_dim), lambda bi, qi, hi: (hi, 0, 0)),   # bk3
                pl.BlockSpec((pl.Squeezed(), d, head_dim), lambda bi, qi, hi: (hi, 0, 0)),   # wv3
                pl.BlockSpec((pl.Squeezed(), 1, head_dim), lambda bi, qi, hi: (hi, 0, 0)),   # bv3
                pl.BlockSpec((pl.Squeezed(), head_dim, c), lambda bi, qi, hi: (hi, 0, 0)),   # wp3
                pl.BlockSpec((1, c), lambda bi, qi, hi: (0, 0)),                             # bp
            ],
            out_specs=[
                pl.BlockSpec((pl.Squeezed(), block_q, c),
                             lambda bi, qi, hi: (bi, qi, 0)),            # out (acc over hi)
                pl.BlockSpec((pl.Squeezed(), pl.Squeezed(), block_q, m),
                             lambda bi, qi, hi: (bi, hi, qi, 0)),        # attention
            ],
        ),
        compiler_params=pltpu.CompilerParams(
            dimension_semantics=("parallel", "parallel", "arbitrary"),
            vmem_limit_bytes=vmem_limit,
        ),
    )(x, y, wq3, bq3, wk3, bk3, wv3, bv3, wp3, bp2)

    if lane_dense_attention:
        return out, attn_bhnm            # (b, h, n, m): lane-dense, no extra HBM pass
    # PyTorch-matching (b, n, m, h): costs a full HBM relayout of the largest
    # tensor — prefer the default lane-dense layout when the consumer allows.
    return out, jnp.transpose(attn_bhnm, (0, 2, 3, 1))


def _reference(x, y, params, num_heads):
    """Pure-JAX reference mirroring the PyTorch forward (mask=None, dropout=0)."""
    with jax.default_matmul_precision("highest"):
        b, n, c = x.shape
        _, m, d = y.shape
        hd = c // num_heads
        scale = hd ** (-0.5)
        wq, bq, wkv, bkv, wp, bp = params
        q = (x @ wq + bq).reshape(b, n, num_heads, hd)
        kv = (y @ wkv + bkv).reshape(b, m, 2, num_heads, hd)
        k, v = kv[:, :, 0], kv[:, :, 1]
        att = jnp.einsum('bnhd,bmhd->bnmh', q, k) * scale
        att = jax.nn.softmax(att, axis=2)
        out = jnp.einsum('bnmh,bmhd->bnhd', att, v).reshape(b, n, c)
        out = out @ wp + bp
    return out, att


if __name__ == "__main__":
    # Small deterministic example: b=2, n=8, m=8, dim_self=32, dim_ref=32, heads=4.
    b, n, m = 2, 8, 8
    dim_self, dim_ref, num_heads = 32, 32, 4

    key = jax.random.PRNGKey(0)
    keys = jax.random.split(key, 7)
    x = jax.random.normal(keys[0], (b, n, dim_self), dtype=jnp.float32)
    y = x   # self-attention (the y=None case of the PyTorch forward)

    # Deterministic synthetic parameters, stored (in, out) so forward is x @ W + b.
    wq = jax.random.normal(keys[1], (dim_self, dim_self), dtype=jnp.float32) * 0.1
    bq = jax.random.normal(keys[2], (dim_self,), dtype=jnp.float32) * 0.1
    wkv = jax.random.normal(keys[3], (dim_ref, 2 * dim_self), dtype=jnp.float32) * 0.1
    bkv = jax.random.normal(keys[4], (2 * dim_self,), dtype=jnp.float32) * 0.1
    wp = jax.random.normal(keys[5], (dim_self, dim_self), dtype=jnp.float32) * 0.1
    bp = jax.random.normal(keys[6], (dim_self,), dtype=jnp.float32) * 0.1
    params = (wq, bq, wkv, bkv, wp, bp)

    # Default: lane-dense (b, h, n, m) attention — no wrapper relayout pass.
    out, attn_ld = multi_head_attention(x, y, params, num_heads)
    # PyTorch-matching (b, n, m, h) layout for semantic verification.
    out2, attn_pt = multi_head_attention(x, y, params, num_heads,
                                         lane_dense_attention=False)
    jax.block_until_ready((out, attn_ld, out2, attn_pt))

    ref_out, ref_att = _reference(x, y, params, num_heads)
    assert out.shape == (b, n, dim_self)
    assert attn_ld.shape == (b, num_heads, n, m)
    assert attn_pt.shape == (b, n, m, num_heads)
    # Tolerances cover MXU operand-precision differences (bf16 multiplier
    # passes) between the Mosaic kernel and the XLA reference.
    tol = dict(atol=1e-2, rtol=1e-2)
    assert jnp.allclose(out, ref_out, **tol), "out mismatch (lane-dense call)"
    assert jnp.allclose(out2, ref_out, **tol), "out mismatch (pt-layout call)"
    assert jnp.allclose(attn_pt, ref_att, **tol), "attention mismatch (b,n,m,h)"
    assert jnp.allclose(attn_ld, jnp.transpose(ref_att, (0, 3, 1, 2)), **tol), \
        "attention mismatch (b,h,n,m)"

    print("KERNEL_OK")
</pallas_src>

<mosaic_0001>
module attributes {stable_mosaic.version = 11 : i64} {
  func.func @_mha_kernel(%arg0: i32, %arg1: i32, %arg2: i32, %arg3: memref<1x8x32xf32, #tpu.memory_space<vmem>>, %arg4: memref<1x8x32xf32, #tpu.memory_space<vmem>>, %arg5: memref<1x32x8xf32, #tpu.memory_space<vmem>>, %arg6: memref<1x1x8xf32, #tpu.memory_space<vmem>>, %arg7: memref<1x32x8xf32, #tpu.memory_space<vmem>>, %arg8: memref<1x1x8xf32, #tpu.memory_space<vmem>>, %arg9: memref<1x32x8xf32, #tpu.memory_space<vmem>>, %arg10: memref<1x1x8xf32, #tpu.memory_space<vmem>>, %arg11: memref<1x8x32xf32, #tpu.memory_space<vmem>>, %arg12: memref<1x32xf32, #tpu.memory_space<vmem>>, %arg13: memref<1x8x32xf32, #tpu.memory_space<vmem>>, %arg14: memref<1x1x8x8xf32, #tpu.memory_space<vmem>>) attributes {dimension_semantics = [#tpu.dimension_semantics<parallel>, #tpu.dimension_semantics<parallel>, #tpu.dimension_semantics<arbitrary>], iteration_bounds = array<i64: 2, 1, 4>, scalar_prefetch = 0 : i64, scratch_operands = 0 : i64, tpu.core_type = #tpu.core_type<tc>, window_params = [{transform_indices = @transform_0, window_bounds = array<i64: 1, 8, 32>}, {transform_indices = @transform_1, window_bounds = array<i64: 1, 8, 32>}, {transform_indices = @transform_2, window_bounds = array<i64: 1, 32, 8>}, {transform_indices = @transform_3, window_bounds = array<i64: 1, 1, 8>}, {transform_indices = @transform_4, window_bounds = array<i64: 1, 32, 8>}, {transform_indices = @transform_5, window_bounds = array<i64: 1, 1, 8>}, {transform_indices = @transform_6, window_bounds = array<i64: 1, 32, 8>}, {transform_indices = @transform_7, window_bounds = array<i64: 1, 1, 8>}, {transform_indices = @transform_8, window_bounds = array<i64: 1, 8, 32>}, {pipeline_mode = #tpu.pipeline_mode<synchronous>, transform_indices = @transform_9, window_bounds = array<i64: 1, 32>}, {transform_indices = @transform_10, window_bounds = array<i64: 1, 8, 32>}, {transform_indices = @transform_11, window_bounds = array<i64: 1, 1, 8, 8>}]} {
    %c0 = arith.constant 0 : index
    %c0_0 = arith.constant 0 : index
    %c0_1 = arith.constant 0 : index
    %0 = vector.load %arg3[%c0, %c0_0, %c0_1] : memref<1x8x32xf32, #tpu.memory_space<vmem>>, vector<1x8x32xf32>
    %1 = vector.shape_cast %0 : vector<1x8x32xf32> to vector<8x32xf32>
    %c0_2 = arith.constant 0 : index
    %c0_3 = arith.constant 0 : index
    %c0_4 = arith.constant 0 : index
    %2 = vector.load %arg4[%c0_2, %c0_3, %c0_4] : memref<1x8x32xf32, #tpu.memory_space<vmem>>, vector<1x8x32xf32>
    %3 = vector.shape_cast %2 : vector<1x8x32xf32> to vector<8x32xf32>
    %c0_5 = arith.constant 0 : index
    %c0_6 = arith.constant 0 : index
    %c0_7 = arith.constant 0 : index
    %4 = vector.load %arg5[%c0_5, %c0_6, %c0_7] : memref<1x32x8xf32, #tpu.memory_space<vmem>>, vector<1x32x8xf32>
    %5 = vector.shape_cast %4 : vector<1x32x8xf32> to vector<32x8xf32>
    %cst = arith.constant dense<0.000000e+00> : vector<8x8xf32>
    %6 = tpu.matmul %1, %5, %cst {dimension_numbers = #tpu.dot_dimension_numbers<[1], [0], [0], [1], [0, 0, 1, 1], [], []>} : vector<8x32xf32>, vector<32x8xf32>, vector<8x8xf32> -> vector<8x8xf32>
    %c0_8 = arith.constant 0 : index
    %c0_9 = arith.constant 0 : index
    %c0_10 = arith.constant 0 : index
    %7 = vector.load %arg6[%c0_8, %c0_9, %c0_10] : memref<1x1x8xf32, #tpu.memory_space<vmem>>, vector<1x1x8xf32>
    %8 = vector.shape_cast %7 : vector<1x1x8xf32> to vector<1x8xf32>
    %9 = vector.broadcast %8 : vector<1x8xf32> to vector<8x8xf32>
    %10 = arith.addf %6, %9 : vector<8x8xf32>
    %c0_11 = arith.constant 0 : index
    %c0_12 = arith.constant 0 : index
    %c0_13 = arith.constant 0 : index
    %11 = vector.load %arg7[%c0_11, %c0_12, %c0_13] : memref<1x32x8xf32, #tpu.memory_space<vmem>>, vector<1x32x8xf32>
    %12 = vector.shape_cast %11 : vector<1x32x8xf32> to vector<32x8xf32>
    %cst_14 = arith.constant dense<0.000000e+00> : vector<8x8xf32>
    %13 = tpu.matmul %3, %12, %cst_14 {dimension_numbers = #tpu.dot_dimension_numbers<[1], [0], [0], [1], [0, 0, 1, 1], [], []>} : vector<8x32xf32>, vector<32x8xf32>, vector<8x8xf32> -> vector<8x8xf32>
    %c0_15 = arith.constant 0 : index
    %c0_16 = arith.constant 0 : index
    %c0_17 = arith.constant 0 : index
    %14 = vector.load %arg8[%c0_15, %c0_16, %c0_17] : memref<1x1x8xf32, #tpu.memory_space<vmem>>, vector<1x1x8xf32>
    %15 = vector.shape_cast %14 : vector<1x1x8xf32> to vector<1x8xf32>
    %16 = vector.broadcast %15 : vector<1x8xf32> to vector<8x8xf32>
    %17 = arith.addf %13, %16 : vector<8x8xf32>
    %c0_18 = arith.constant 0 : index
    %c0_19 = arith.constant 0 : index
    %c0_20 = arith.constant 0 : index
    %18 = vector.load %arg9[%c0_18, %c0_19, %c0_20] : memref<1x32x8xf32, #tpu.memory_space<vmem>>, vector<1x32x8xf32>
    %19 = vector.shape_cast %18 : vector<1x32x8xf32> to vector<32x8xf32>
    %cst_21 = arith.constant dense<0.000000e+00> : vector<8x8xf32>
    %20 = tpu.matmul %3, %19, %cst_21 {dimension_numbers = #tpu.dot_dimension_numbers<[1], [0], [0], [1], [0, 0, 1, 1], [], []>} : vector<8x32xf32>, vector<32x8xf32>, vector<8x8xf32> -> vector<8x8xf32>
    %c0_22 = arith.constant 0 : index
    %c0_23 = arith.constant 0 : index
    %c0_24 = arith.constant 0 : index
    %21 = vector.load %arg10[%c0_22, %c0_23, %c0_24] : memref<1x1x8xf32, #tpu.memory_space<vmem>>, vector<1x1x8xf32>
    %22 = vector.shape_cast %21 : vector<1x1x8xf32> to vector<1x8xf32>
    %23 = vector.broadcast %22 : vector<1x8xf32> to vector<8x8xf32>
    %24 = arith.addf %20, %23 : vector<8x8xf32>
    %cst_25 = arith.constant dense<0.000000e+00> : vector<8x8xf32>
    %25 = tpu.matmul %10, %17, %cst_25 {dimension_numbers = #tpu.dot_dimension_numbers<[1], [1], [0], [0], [0, 0, 1, 0], [], []>} : vector<8x8xf32>, vector<8x8xf32>, vector<8x8xf32> -> vector<8x8xf32>
    %cst_26 = arith.constant dense<0xFF800000> : vector<8xf32>
    %26 = vector.multi_reduction <maximumf>, %25, %cst_26 [1] : vector<8x8xf32> to vector<8xf32>
    %27 = vector.shape_cast %26 : vector<8xf32> to vector<8x1xf32>
    %28 = vector.broadcast %27 : vector<8x1xf32> to vector<8x8xf32>
    %29 = arith.subf %25, %28 : vector<8x8xf32>
    %30 = math.exp %29 : vector<8x8xf32>
    %cst_27 = arith.constant dense<0.000000e+00> : vector<8xf32>
    %31 = vector.multi_reduction <add>, %30, %cst_27 [1] : vector<8x8xf32> to vector<8xf32>
    %32 = vector.shape_cast %31 : vector<8xf32> to vector<8x1xf32>
    %cst_28 = arith.constant 1.000000e+00 : f32
    %33 = vector.broadcast %cst_28 : f32 to vector<8x1xf32>
    %34 = arith.divf %33, %32 : vector<8x1xf32>
    %35 = vector.broadcast %34 : vector<8x1xf32> to vector<8x8xf32>
    %36 = arith.mulf %30, %35 : vector<8x8xf32>
    %c0_29 = arith.constant 0 : index
    %c0_30 = arith.constant 0 : index
    %c0_31 = arith.constant 0 : index
    %c0_32 = arith.constant 0 : index
    %37 = vector.load %arg14[%c0_29, %c0_30, %c0_31, %c0_32] : memref<1x1x8x8xf32, #tpu.memory_space<vmem>>, vector<1x1x8x8xf32>
    %38 = vector.shape_cast %37 : vector<1x1x8x8xf32> to vector<8x8xf32>
    %39 = vector.shape_cast %36 : vector<8x8xf32> to vector<1x1x8x8xf32>
    tpu.vector_store %arg14[%c0_29, %c0_30, %c0_31, %c0_32], %39 {strides = array<i32>} : memref<1x1x8x8xf32, #tpu.memory_space<vmem>>, vector<1x1x8x8xf32>,
    %cst_33 = arith.constant dense<0.000000e+00> : vector<8x8xf32>
    %40 = tpu.matmul %36, %24, %cst_33 {dimension_numbers = #tpu.dot_dimension_numbers<[1], [0], [0], [1], [0, 0, 1, 1], [], []>} : vector<8x8xf32>, vector<8x8xf32>, vector<8x8xf32> -> vector<8x8xf32>
    %c0_34 = arith.constant 0 : index
    %c0_35 = arith.constant 0 : index
    %c0_36 = arith.constant 0 : index
    %41 = vector.load %arg11[%c0_34, %c0_35, %c0_36] : memref<1x8x32xf32, #tpu.memory_space<vmem>>, vector<1x8x32xf32>
    %42 = vector.shape_cast %41 : vector<1x8x32xf32> to vector<8x32xf32>
    %cst_37 = arith.constant dense<0.000000e+00> : vector<8x32xf32>
    %43 = tpu.matmul %40, %42, %cst_37 {dimension_numbers = #tpu.dot_dimension_numbers<[1], [0], [0], [1], [0, 0, 1, 1], [], []>} : vector<8x8xf32>, vector<8x32xf32>, vector<8x32xf32> -> vector<8x32xf32>
    %c0_i32 = arith.constant 0 : i32
    %44 = arith.cmpi eq, %arg2, %c0_i32 : i32
    %45 = arith.extui %44 : i1 to i32
    %c0_i32_38 = arith.constant 0 : i32
    %46 = arith.cmpi ne, %45, %c0_i32_38 : i32
    scf.if %46 {
      %c0_41 = arith.constant 0 : index
      %c0_42 = arith.constant 0 : index
      %50 = vector.load %arg12[%c0_41, %c0_42] : memref<1x32xf32, #tpu.memory_space<vmem>>, vector<1x32xf32>
      %51 = vector.broadcast %50 : vector<1x32xf32> to vector<8x32xf32>
      %52 = arith.addf %43, %51 : vector<8x32xf32>
      %c0_43 = arith.constant 0 : index
      %c0_44 = arith.constant 0 : index
      %c0_45 = arith.constant 0 : index
      %53 = vector.load %arg13[%c0_43, %c0_44, %c0_45] : memref<1x8x32xf32, #tpu.memory_space<vmem>>, vector<1x8x32xf32>
      %54 = vector.shape_cast %53 : vector<1x8x32xf32> to vector<8x32xf32>
      %55 = vector.shape_cast %52 : vector<8x32xf32> to vector<1x8x32xf32>
      tpu.vector_store %arg13[%c0_43, %c0_44, %c0_45], %55 {strides = array<i32>} : memref<1x8x32xf32, #tpu.memory_space<vmem>>, vector<1x8x32xf32>,
    } else {
    }
    %c0_i32_39 = arith.constant 0 : i32
    %47 = arith.cmpi sgt, %arg2, %c0_i32_39 : i32
    %48 = arith.extui %47 : i1 to i32
    %c0_i32_40 = arith.constant 0 : i32
    %49 = arith.cmpi ne, %48, %c0_i32_40 : i32
    scf.if %49 {
      %c0_41 = arith.constant 0 : index
      %c0_42 = arith.constant 0 : index
      %c0_43 = arith.constant 0 : index
      %50 = vector.load %arg13[%c0_41, %c0_42, %c0_43] : memref<1x8x32xf32, #tpu.memory_space<vmem>>, vector<1x8x32xf32>
      %51 = vector.shape_cast %50 : vector<1x8x32xf32> to vector<8x32xf32>
      %52 = arith.addf %51, %43 : vector<8x32xf32>
      %c0_44 = arith.constant 0 : index
      %c0_45 = arith.constant 0 : index
      %c0_46 = arith.constant 0 : index
      %53 = vector.load %arg13[%c0_44, %c0_45, %c0_46] : memref<1x8x32xf32, #tpu.memory_space<vmem>>, vector<1x8x32xf32>
      %54 = vector.shape_cast %53 : vector<1x8x32xf32> to vector<8x32xf32>
      %55 = vector.shape_cast %52 : vector<8x32xf32> to vector<1x8x32xf32>
      tpu.vector_store %arg13[%c0_44, %c0_45, %c0_46], %55 {strides = array<i32>} : memref<1x8x32xf32, #tpu.memory_space<vmem>>, vector<1x8x32xf32>,
    } else {
    }
    return
  }
  func.func @transform_0(%arg0: i32, %arg1: i32, %arg2: i32) -> (i32, i32, i32) {
    %c0_i32 = arith.constant 0 : i32
    %c0_i32_0 = arith.constant 0 : i32
    return %arg0, %arg1, %c0_i32 : i32, i32, i32
  }
  func.func @transform_1(%arg0: i32, %arg1: i32, %arg2: i32) -> (i32, i32, i32) {
    %c0_i32 = arith.constant 0 : i32
    %c0_i32_0 = arith.constant 0 : i32
    %c0_i32_1 = arith.constant 0 : i32
    return %arg0, %c0_i32, %c0_i32_0 : i32, i32, i32
  }
  func.func @transform_2(%arg0: i32, %arg1: i32, %arg2: i32) -> (i32, i32, i32) {
    %c0_i32 = arith.constant 0 : i32
    %c0_i32_0 = arith.constant 0 : i32
    %c0_i32_1 = arith.constant 0 : i32
    return %arg2, %c0_i32, %c0_i32_0 : i32, i32, i32
  }
  func.func @transform_3(%arg0: i32, %arg1: i32, %arg2: i32) -> (i32, i32, i32) {
    %c0_i32 = arith.constant 0 : i32
    %c0_i32_0 = arith.constant 0 : i32
    %c0_i32_1 = arith.constant 0 : i32
    return %arg2, %c0_i32, %c0_i32_0 : i32, i32, i32
  }
  func.func @transform_4(%arg0: i32, %arg1: i32, %arg2: i32) -> (i32, i32, i32) {
    %c0_i32 = arith.constant 0 : i32
    %c0_i32_0 = arith.constant 0 : i32
    %c0_i32_1 = arith.constant 0 : i32
    return %arg2, %c0_i32, %c0_i32_0 : i32, i32, i32
  }
  func.func @transform_5(%arg0: i32, %arg1: i32, %arg2: i32) -> (i32, i32, i32) {
    %c0_i32 = arith.constant 0 : i32
    %c0_i32_0 = arith.constant 0 : i32
    %c0_i32_1 = arith.constant 0 : i32
    return %arg2, %c0_i32, %c0_i32_0 : i32, i32, i32
  }
  func.func @transform_6(%arg0: i32, %arg1: i32, %arg2: i32) -> (i32, i32, i32) {
    %c0_i32 = arith.constant 0 : i32
    %c0_i32_0 = arith.constant 0 : i32
    %c0_i32_1 = arith.constant 0 : i32
    return %arg2, %c0_i32, %c0_i32_0 : i32, i32, i32
  }
  func.func @transform_7(%arg0: i32, %arg1: i32, %arg2: i32) -> (i32, i32, i32) {
    %c0_i32 = arith.constant 0 : i32
    %c0_i32_0 = arith.constant 0 : i32
    %c0_i32_1 = arith.constant 0 : i32
    return %arg2, %c0_i32, %c0_i32_0 : i32, i32, i32
  }
  func.func @transform_8(%arg0: i32, %arg1: i32, %arg2: i32) -> (i32, i32, i32) {
    %c0_i32 = arith.constant 0 : i32
    %c0_i32_0 = arith.constant 0 : i32
    %c0_i32_1 = arith.constant 0 : i32
    return %arg2, %c0_i32, %c0_i32_0 : i32, i32, i32
  }
  func.func @transform_9(%arg0: i32, %arg1: i32, %arg2: i32) -> (i32, i32) {
    %c0_i32 = arith.constant 0 : i32
    %c0_i32_0 = arith.constant 0 : i32
    %c0_i32_1 = arith.constant 0 : i32
    return %c0_i32, %c0_i32_0 : i32, i32
  }
  func.func @transform_10(%arg0: i32, %arg1: i32, %arg2: i32) -> (i32, i32, i32) {
    %c0_i32 = arith.constant 0 : i32
    %c0_i32_0 = arith.constant 0 : i32
    return %arg0, %arg1, %c0_i32 : i32, i32, i32
  }
  func.func @transform_11(%arg0: i32, %arg1: i32, %arg2: i32) -> (i32, i32, i32, i32) {
    %c0_i32 = arith.constant 0 : i32
    %c0_i32_0 = arith.constant 0 : i32
    return %arg0, %arg2, %arg1, %c0_i32 : i32, i32, i32, i32
  }
}

</mosaic_0001>

<bundles_post_ra>
// kernel: tpu_custom_call.1
= control target key start
LH: loop header
LB: loop body
LE: loop exit
PB: predicated region body
PF: predicated region fallthrough
CT: control target
= control target key end

     0   :  { %s2033_s0 = inlined_call_operand.vmem [shape: f32[2,8,32], index: 0, kind: input, shape index: {}]   ;;  %s2034_s1 = inlined_call_operand.vmem [shape: f32[2,8,32], index: 1, kind: input, shape index: {}]   ;;  %s2035_s2 = inlined_call_operand.vmem [shape: f32[4,32,8], index: 2, kind: input, shape index: {}]   ;;  %s2036_s3 = inlined_call_operand.vmem [shape: f32[4,1,8], index: 3, kind: input, shape index: {}]   ;;  %s2037_s4 = inlined_call_operand.vmem [shape: f32[4,32,8], index: 4, kind: input, shape index: {}]   ;;  %s2038_s5 = inlined_call_operand.vmem [shape: f32[4,1,8], index: 5, kind: input, shape index: {}]   ;;  %s2039_s6 = inlined_call_operand.vmem [shape: f32[4,32,8], index: 6, kind: input, shape index: {}]   ;;  %s2040_s7 = inlined_call_operand.vmem [shape: f32[4,1,8], index: 7, kind: input, shape index: {}]   ;;  %s2041_s8 = inlined_call_operand.vmem [shape: f32[4,8,32], index: 8, kind: input, shape index: {}]   ;;  %s2042_s9 = inlined_call_operand.vmem [shape: f32[1,32], index: 9, kind: input, shape index: {}]   ;;  %s2043_s10 = inlined_call_operand.hbm [shape: f32[2,8,32], index: 10, kind: output, shape index: {0}]   ;;  %s2044_s11 = inlined_call_operand.hbm [shape: f32[2,4,8,8], index: 11, kind: output, shape index: {1}]  }
   0x1   :  { %2058 = sst [smem:[#allocation16_spill]] %s2033_s0 }
   0x2   :  { %2059 = sst [smem:[#allocation17_spill]] %s2034_s1 }
   0x3   :  { %2060 = sst [smem:[#allocation18_spill]] %s2035_s2 }
   0x4   :  { %2061 = sst [smem:[#allocation19_spill]] %s2036_s3 }
   0x5   :  { %2062 = sst [smem:[#allocation20_spill]] %s2037_s4 }
   0x6   :  { %2063 = sst [smem:[#allocation21_spill]] %s2038_s5 }
   0x7   :  { %2064 = sst [smem:[#allocation22_spill]] %s2039_s6 }
   0x8   :  { %2065 = sst [smem:[#allocation23_spill]] %s2040_s7 }
   0x9   :  { %2066 = sst [smem:[#allocation24_spill]] %s2042_s9 }
   0xa   :  { %2067 = sst [smem:[#allocation25_spill]] %s2043_s10 }
   0xb   :  { %2068 = sst [smem:[#allocation26_spill]] %s2044_s11 }
   0xc   :  { %17 = vsyncpa [#allocation3], 0 }
   0xd   :  { %19 = vsyncpa [#allocation3 + $0x1], 0 }
   0xe   :  { %20 = vsyncpa [#allocation5], 0 }
   0xf   :  { %22 = vsyncpa [#allocation5 + $0x1], 0  ;;  %s1735_s17 = smov 0   ;;  %s1737_s18 = smov 0  }
  0x10   :  { %s1739_s19 = smov 0   ;;  %s1741_s20 = smov 0  }
  0x11   :  { %s1743_s21 = smov 0   ;;  %s1745_s22 = smov 0  }
  0x12   :  { %s1747_s23 = smov 0   ;;  %s1749_s24 = smov 0  }
  0x13   :  { %s1751_s25 = smov 0   ;;  %s1753_s26 = smov 0  }
  0x14   :  { %s1755_s27 = smov 0  }
  0x15 LB: > { %2069 = sst [smem:[#allocation8_spill]] %s1641_s20  ;;  %s1309_s28 = sadd.s32 4294967295, %s1669_s27   ;;  %s1669_s27 = sphi %s1755_s27, %s28_s27   ;;  %s1665_s26 = sphi %s1753_s26, %s2107_s26   ;;  %s1661_s25 = sphi %s1751_s25, %s2113_s25   ;;  %s1657_s24 = sphi %s1749_s24, %s2105_s24   ;;  %s1653_s23 = sphi %s1747_s23, %s2104_s23   ;;  %s1649_s22 = sphi %s1745_s22, %s2103_s22   ;;  %s1645_s21 = sphi %s1743_s21, %s2112_s21   ;;  %s1641_s20 = sphi %s1741_s20, %s2111_s20   ;;  %s1637_s19 = sphi %s1739_s19, %s2110_s19   ;;  %s1633_s18 = sphi %s1737_s18, %s2109_s18   ;;  %s1629_s17 = sphi %s1735_s17, %s2108_s17  }
  0x16   : > { %2070 = sst [smem:[#allocation9_spill]] %s1649_s22  ;;  %s1310_s29 = sadd.s32 4294967294, %s1669_s27  }
  0x17   : > { %2071 = sst [smem:[#allocation10_spill]] %s1661_s25  ;;  %s40_s30 = sadd.s32 1, %s1661_s25 }
  0x18   : > { %2072 = sst [smem:[#allocation11_spill]] %s1665_s26  ;;  %s47_s12 = sadd.s32 1, %s1665_s26 }
  0x19   : > { %p41_p0 = scmp.ge.s32.totalorder %s40_s30, 4  ;;  %s313_s13 = sadd.s32 1, %s1649_s22 }
  0x1a   : > { %p323_p1 = scmp.ne.s32.totalorder %s1649_s22, %s1645_s21  ;;  %p1797_p2 = scmp.eq.s32.totalorder %s1309_s28, 7 }
  0x1b   : > { %s2115_s30 = smov (%p41_p0, %s40_s30), 0  ;;  %s2117_s12 = smov (!%p41_p0, %s47_s12), %s1665_s26 }
  0x1c   : > { %2074 = sst [smem:[#allocation12_spill]] %s2115_s30  ;;  %p1806_p3 = por %p1797_p2, %p323_p1 }
  0x1d   : > { %p329_p4 = scmp.ne.s32.totalorder %s1645_s21, %s1641_s20  ;;  %p49_p5 = scmp.ge.s32.totalorder %s2117_s12, 2 }
  0x1e   : > { %s2075_s15 = scalar_select %p1806_p3, 1, 0 }
  0x1f   : > { %p1812_p6 = scmp.eq.s32.totalorder %s1310_s29, 7  ;;  %s337_s28 = ssub.s32 %s1661_s25, %s2115_s30 }
  0x20   : > { %2076 = sst [smem:[#allocation13_spill]] %s2075_s15  ;;  %s343_s11 = sadd.s32 1, %s1637_s19 }
  0x21   : > { %s2119_s12 = smov (%p49_p5, %s2117_s12), 0  ;;  %p1823_p7 = por %p1812_p6, %p329_p4 }
  0x22   : > { %2078 = sst [smem:[#allocation14_spill]] %s2119_s12  ;;  %p353_p8 = scmp.ne.s32.totalorder %s1637_s19, %s1633_s18 }
  0x23   : > { %s2079_s10 = scalar_select %p1823_p7, 1, 0 }
  0x24   : > { %s308_s20 = ssub.s32 %s1665_s26, %s2119_s12  ;;  %p359_p9 = scmp.ne.s32.totalorder %s1633_s18, %s1629_s17 }
  0x25   : > { %p311_p10 = scmp.eq.s32.totalorder %s308_s20, 0  ;;  %s338_s29 = sor.u32 %s337_s28, %s308_s20 }
  0x26   : > { %p341_p11 = scmp.eq.s32.totalorder %s338_s29, 0  ;;  %p1835_p12 = por %p353_p8, %p1797_p2 }
  0x27   : > { %s1840_s30 = scalar_select %p311_p10, %s1649_s22, %s313_s13  }
  0x28   : > { %s1843_s25 = scalar_select %p341_p11, %s1637_s19, %s343_s11  }
  0x29   : > { %2081 = sst [smem:[#allocation15_spill]] %s1840_s30  ;;  %p1847_p13 = por %p359_p9, %p1812_p6 }
  0x2a   : > { %p1313_p0 = scmp.ge.s32.totalorder %s1669_s27, 1  ;;  %p447_p1 = scmp.lt.s32.totalorder %s1669_s27, 9 }
  0x2b   : > { %s2082_s9 = scalar_select %p1847_p13, 1, 0 }
  0x2c   : > { %p448_p4 = pnand %p1313_p0, %p447_p1 }
  0x2d   : > { %p537_p2 = scmp.lt.s32.totalorder (!%p448_p4), %s1653_s23, 3  ;;  %s2052_s20 = sand.u32 (!%p448_p4), 1, %s1645_s21  }
  0x2e   : > { %451 = sbr.rel (%p448_p4) target bundleno = 1222 (0x4c6), region = 60  ;;  %s1858_s11 = sshll.u32 (!%p448_p4), %s2052_s20, 3 }
  0x2f   : > { %p526_p5 = scmp.lt.s32.totalorder (!%p448_p4), %s1657_s24, 1  ;;  %s2083_s4 = sld [smem:[#allocation20_spill]] (!%p448_p4) }
  0x30   : > { %s2084_s2 = sld [smem:[#allocation18_spill]] (!%p448_p4)  ;;  %p1335_p6 = scmp.ne.s32.totalorder (!%p448_p4), %s1653_s23, 0 }
  0x31   : > { %s2085_s1 = sld [smem:[#allocation17_spill]] (!%p448_p4) }
  0x32   : > { %s2086_s0 = sld [smem:[#allocation16_spill]] (!%p448_p4) }
  0x33   : > { %v1671_v0 = vmov 0.0   ;;  %s1863_s13 = scalar_select %p537_p2, %s1653_s23, 3  ;;  %vm1672_vm0 = vmmov 0   ;;  %vm578_vm1 = vcmask 261120   ;;  %vm817_vm2 = vcmask 64512  }
  0x34   : > { %1380 = vmatprep.subr.mxu1 %v1671_v0  ;;  %1369 = vmatprep.subr.mxu0 %v1671_v0  ;;  %s527_s30 = scalar_select %p526_p5, %s1657_s24, 1 }
  0x35   : > { %1388 = vmatprep.mubr.msk.f32.mxu1 %vm1672_vm0, %v1671_v0  ;;  %1377 = vmatprep.mubr.msk.f32.mxu0 %vm1672_vm0, %v1671_v0  ;;  %s1870_s14 = sshll.u32 %s1863_s13, 5  ;;  %s2087_s5 = sld [smem:[#allocation21_spill]] }
  0x36   : > { %s549_s29 = scalar_lea.vmem %s2083_s4, %s1870_s14  ;;  %s541_s26 = scalar_lea.vmem %s2084_s2, %s1870_s14 }
  0x37   : > { %v655_v1 = vld [vmem:[%s549_s29 + $0x18] sm:$0xff]  ;;  %v654_v3 = vld [vmem:[%s549_s29 + $0x10] sm:$0xff]  ;;  %v653_v5 = vld [vmem:[%s549_s29 + $0x8] sm:$0xff]  ;;  %s1316_s16 = sshll.u32 %s527_s30, 3  ;;  %s2088_s3 = sld [smem:[#allocation19_spill]] }
  0x38   : > { %v570_v2 = vld [vmem:[%s541_s26 + $0x18] sm:$0xff]  ;;  %1381 = vmatpush3.msra.mxu1 %v655_v1  ;;  %v569_v4 = vld [vmem:[%s541_s26 + $0x10] sm:$0xff]  ;;  %v568_v6 = vld [vmem:[%s541_s26 + $0x8] sm:$0xff]  ;;  %s536_s12 = scalar_lea.vmem %s2085_s1, %s1316_s16  ;;  %s532_s22 = scalar_lea.vmem %s2086_s0, %s1316_s16 }
  0x39   : > { %1370 = vmatpush3.msra.mxu0 %v570_v2  ;;  %1382 = vmatprep.subr.mxu1 %v1671_v0  ;;  %v652_v7 = vld [vmem:[%s549_s29] sm:$0xff]  ;;  %s2089_s6 = sld [smem:[#allocation22_spill]]  ;;  %s1324_s4 = sshll.u32 %s1863_s13, 3 }
  0x3a   : > { %1371 = vmatprep.subr.mxu0 %v1671_v0  ;;  %1383 = vmatpush3.msra.mxu1 %v654_v3  ;;  %v567_v8 = vld [vmem:[%s541_s26] sm:$0xff]  ;;  %s2090_s7 = sld [smem:[#allocation23_spill]]  ;;  %s564_s30 = scalar_lea.vmem %s2041_s8, %s1324_s4 }
  0x3b   : > { %1372 = vmatpush3.msra.mxu0 %v569_v4  ;;  %1384 = vmatprep.subr.mxu1 %v1671_v0  ;;  %v566_v9 = vld [vmem:[%s536_s12] sm:$0xff]  ;;  %s2091_s20 = sld [smem:[#allocation24_spill]] (!%p1335_p6) }
  0x3c   : > { %1373 = vmatprep.subr.mxu0 %v1671_v0  ;;  %1385 = vmatpush3.msra.mxu1 %v653_v5  ;;  %v565_v10 = vld [vmem:[%s532_s22] sm:$0xff]  ;;  %s552_s22 = scalar_lea.vmem %s2087_s5, %s1863_s13 }
  0x3d   : > { %1374 = vmatpush3.msra.mxu0 %v568_v6  ;;  %1386 = vmatprep.subr.mxu1 %v1671_v0  ;;  %s544_s29 = scalar_lea.vmem %s2088_s3, %s1863_s13  ;;  %v1327_v11 = vld [vmem:[%s552_s22] ss:$0 sm:$0xff] }
  0x3e   : > { %1375 = vmatprep.subr.mxu0 %v1671_v0  ;;  %1387 = vmatpush3.msra.mxu1 %v652_v7  ;;  %v1325_v12 = vld [vmem:[%s544_s29] ss:$0 sm:$0xff]  ;;  %s2056_s29 = sand.u32 1, %s1633_s18  }
  0x3f   : > { %1376 = vmatpush3.msra.mxu0 %v567_v8  ;;  %1389 = vmatmul.mubr.msk.f32.vlgmr.msra.gmra.mxu1 %vm578_vm1, %v566_v9  ;;  %s557_s12 = scalar_lea.vmem %s2089_s6, %s1870_s14  ;;  %v980_v35 = vld [vmem:[%s564_s30] sm:$0xff]  ;;  %s1938_s16 = sshll.u32 %s2056_s29, 3 }
  0x40   : > { %1378 = vmatmul.mubr.msk.f32.vlgmr.msra.gmra.mxu0 %vm578_vm1, %v565_v10  ;;  %1402 = vmatprep.subr.mxu1 %v1671_v0  ;;  %v739_v19 = vld [vmem:[%s557_s12 + $0x18] sm:$0xff]  ;;  %v738_v20 = vld [vmem:[%s557_s12 + $0x10] sm:$0xff]  ;;  %v737_v21 = vld [vmem:[%s557_s12 + $0x8] sm:$0xff]  ;;  %s560_s2 = scalar_lea.vmem %s2090_s7, %s1863_s13  ;;  %s2057_s28 = scalar_lea.vmem [#allocation4], %s1938_s16 }
  0x41   : > { %1404 = vmatprep.mubr.msk.f32.mxu1 %vm1672_vm0, %v1671_v0  ;;  %1391 = vmatprep.subr.mxu0 %v1671_v0  ;;  %v736_v22 = vld [vmem:[%s557_s12] sm:$0xff]  ;;  %s518_s13 = scalar_lea.vmem [#allocation2], %s1858_s11 }
  0x42   : > { %1399 = vmatprep.mubr.msk.f32.mxu0 %vm1672_vm0, %v1671_v0  ;;  %1392 = vmatpush3.msra.mxu0 %v739_v19  ;;  %v1329_v32 = vld [vmem:[%s560_s2] ss:$0 sm:$0xff] }
  0x43   : > { %1393 = vmatprep.subr.mxu0 %v1671_v0 }
  0x44   : > { %1394 = vmatpush3.msra.mxu0 %v738_v20 }
  0x45   : > { %1395 = vmatprep.subr.mxu0 %v1671_v0 }
  0x46   : > { %1396 = vmatpush3.msra.mxu0 %v737_v21 }
  0x47   : > { %1397 = vmatprep.subr.mxu0 %v1671_v0 }
  0x48   : > { %1398 = vmatpush3.msra.mxu0 %v736_v22 }
  0x49   : > { %1400 = vmatmul.mubr.msk.f32.vlgmr.msra.gmra.mxu0 %vm578_vm1, %v566_v9  ;;  %1412 = vmatprep.subr.mxu0 %v1671_v0 }
  0x4a   : > { %1414 = vmatprep.mubr.msk.f32.mxu0 %vm1672_vm0, %v1671_v0  ;;  %1413 = vmatpush3.msra.mxu0 %v980_v35 }
  0xff   : > { %v732_v13 = vpop.f32.mrf.mxu1 }
 0x100   : > { %v648_v14 = vpop.f32.mrf.mxu0  ;;  %v733_v15 = vadd.f32 %v1327_v11, %v732_v13 }
 0x101   : > { %v649_v16 = vadd.f32 %v1325_v12, %v648_v14  ;;  %v1390_v17 = vpop.f32.mrf.mxu1 }
 0x102   : > { %v1379_v18 = vpop.f32.mrf.mxu0  ;;  %1403 = vmatpush3.xpose.msk.msra.mxu1 %vm817_vm2, %v733_v15 }
 0x103   : > { %1407 = vmatprep.subr.mxu1 %v1671_v0 }
 0x105   : > { %1405 = vmatmul.mubr.msk.f32.vlgmr.msra.gmra.mxu1 %vm817_vm2, %v649_v16 }
 0x106   : > { %1409 = vmatprep.mubr.msk.f32.mxu1 %vm1672_vm0, %v1671_v0 }
 0x109   : > { %v813_v31 = vpop.f32.mrf.mxu0 }
 0x10a   : > { %v814_v33 = vadd.f32 %v1329_v32, %v813_v31 }
 0x10b   : > { %v1401_v34 = vpop.f32.mrf.mxu0 }
 0x10c   : > { %1408 = vmatpush3.msra.mxu1 %v814_v33 }
 0x1c5   : > { %v890_v23 = vpop.f32.mrf.mxu1 }
 0x1c6   : > { %v894_v24 = vsel %vm817_vm2, %v890_v23, -inf }
 0x1c7   : > { %895 = vmax.xlane.f32.xlu0 %v894_v24  ;;  %v1406_v25 = vpop.f32.mrf.mxu1 }
 0x250   : > { %v896_v26 = vpop.xlane.xlu0 %895 }
 0x251   : > { %v897_v27 = vsub.f32 %v890_v23, %v896_v26 }
 0x253   : > { %v898_v28 = vmul.f32 1.442695, %v897_v27 }
 0x255   : > { %1519 = vpow2.f32 %v898_v28 }
 0x262   : > { %v1520_v29 = vpop.eup %1519 }
 0x263   : > { %v900_v30 = vsel %vm817_vm2, %v1520_v29, 0.0 }
 0x264   : > { %901 = vadd.xlane.f32.xlu0 %v900_v30 }
 0x2ed   : > { %v902_v36 = vpop.xlane.xlu0 %901 }
 0x2ee   : > { %1521 = vrcp.f32 %v902_v36 }
 0x2fb   : > { %v1522_v37 = vpop.eup %1521 }
 0x2fc   : > { %v905_v38 = vmul.f32 %v1522_v37, %v1520_v29 }
 0x2fe   : > { %906 = vst.msk [vmem:[%s2057_s28] sm:$0xff] %vm817_vm2, %v905_v38  ;;  %1410 = vmatmul.mubr.msk.f32.vlgmr.msra.gmra.mxu1 %vm817_vm2, %v905_v38 }
 0x3be   : > { %v976_v39 = vpop.f32.mrf.mxu1 }
 0x3bf   : > { %1415 = vmatmul.mubr.msk.f32.vlgmr.msra.gmra.mxu0 %vm817_vm2, %v976_v39 }
 0x3c0   : > { %v1411_v40 = vpop.f32.mrf.mxu1 }
 0x47d   : > { %1057 = sbr.rel (%p1335_p6) target bundleno = 1158 (0x486), region = 64 }
 0x47f   : > { %v1050_v41 = vpop.f32.mrf.mxu0 }
 0x481   : > { %v1416_v42 = vpop.f32.mrf.mxu0 }
 0x482   : > { %v1336_v43 = vld [vmem:[%s2091_s20] ss:$0 sm:$0xff] }
 0x483   : > { %v1065_v44 = vadd.f32 %v1336_v43, %v1050_v41 }
 0x485   : > { %1066 = vst.msk [vmem:[%s518_s13] sm:$0xff] %vm578_vm1, %v1065_v44 }
 0x486 PF: > { %p1337_p8 = scmp.le.s32.totalorder %s1653_s23, 0 }
 0x488   : > { %1070 = sbr.rel (%p1337_p8) target bundleno = 1169 (0x491), region = 68 }
 0x48d   : > { %v1071_v45 = vld [vmem:[%s518_s13] sm:$0xff] }
 0x48e   : > { %v1072_v46 = vadd.f32 %v1071_v45, %v1050_v41 }
 0x490   : > { %1073 = vst.msk [vmem:[%s518_s13] sm:$0xff] %vm578_vm1, %v1072_v46 }
 0x491 PF: > { %s1340_s2 = sshll.u32 %s1657_s24, 7  ;;  %s2093_s26 = sld [smem:[#allocation25_spill]] }
 0x492   : > { %s1094_s14 = sshll.u32 %s518_s13, 4  ;;  %s2095_s20 = sand.u32 1, %s1645_s21   ;;  %s1095_s14 = int_to_ptr.vmem [resolvable:$true] %s1094_s14 }
 0x493   : > { %s1075_s29 = scalar_lea.sflag [#allocation3], %s2095_s20  ;;  %s1523_s28 = scalar_lea.vmem %s1095_s14, 128 }
 0x494   : > { %p1524_p9 = scmp.ne.s32.totalorder %s1095_s14, %s1523_s28  ;;  %s1673_s0 = smov [#allocation2]  }
 0x495   : > { %s1527_s1 = sshll.u32 %s1673_s0, 4  ;;  %s1528_s1 = int_to_ptr.vmem [resolvable:$false] %s1527_s1 }
 0x496   : > { %p1525_p10 = pnand %p1524_p9, %p1806_p3  ;;  %s1529_s3 = scalar_lea.vmem %s1528_s1, 256 }
 0x497   : > { %s2094_s30 = smov %s2093_s26  ;;  %s1092_s12 = scalar_lea.hbm %s2093_s26, %s1340_s2 }
 0x498   : > { %p1526_p11 = pneg %p1525_p10  ;;  %p1530_p0 = scmp.lt.s32.totalorder %s1095_s14, %s1528_s1 }
 0x499   : > { %p1531_p1 = scmp.lt.s32.totalorder %s1529_s3, %s1523_s28 }
 0x49b   : > { %p1532_p4 = por %p1531_p1, %p1530_p0 }
 0x49d   : > { %p1533_p2 = pnand %p1532_p4, %p1526_p11 }
 0x49f   : > { %1536 = shalt.err (!%p1533_p2)
}
 0x4a0   : > { %s1537_s4 = scalar_lea.hbm %s1092_s12, 128  ;;  %s1541_s22 = scalar_lea.hbm %s2094_s30, 256 }
 0x4a1   : > { %p1538_p5 = scmp.ne.s32.totalorder %s1092_s12, %s1537_s4  ;;  %p1542_p9 = scmp.lt.s32.totalorder %s1092_s12, %s2094_s30 }
 0x4a2   : > { %p1543_p10 = scmp.lt.s32.totalorder %s1541_s22, %s1537_s4 }
 0x4a3   : > { %p1539_p6 = pnand %p1538_p5, %p1806_p3 }
 0x4a4   : > { %p1544_p13 = por %p1543_p10, %p1542_p9 }
 0x4a5   : > { %p1540_p8 = pneg %p1539_p6 }
 0x4a7   : > { %p1545_p7 = pnand %p1544_p13, %p1540_p8 }
 0x4a9   : > { %1548 = shalt.err (!%p1545_p7)
}
 0x4aa   : > { %1417 = dma.vmem_to_hbm [thread:$0]  (%p1806_p3), %s1095_s14, 128, %s1092_s12, %s1075_s29  }
 0x4ab   : > { %s1341_s0 = sshll.u32 %s1657_s24, 2  ;;  %s2096_s1 = scalar_lea.vmem [#allocation4], %s1938_s16 }
 0x4ac   : > { %s1110_s3 = sshll.u32 %s2096_s1, 4  ;;  %s1106_s28 = sadd.s32 %s1653_s23, %s1341_s0  ;;  %s1111_s3 = int_to_ptr.vmem [resolvable:$true] %s1110_s3 }
 0x4ad   : > { %s1342_s13 = sshll.u32 %s1106_s28, 7  ;;  %s2097_s4 = sld [smem:[#allocation26_spill]] }
 0x4ae   : > { %s2098_s20 = sand.u32 1, %s1633_s18   ;;  %s1549_s6 = scalar_lea.vmem %s1111_s3, 128 }
 0x4af   : > { %s1080_s5 = scalar_lea.sflag [#allocation5], %s2098_s20  ;;  %p1550_p7 = scmp.ne.s32.totalorder %s1111_s3, %s1549_s6 }
 0x4b0   : > { %s1674_s11 = smov [#allocation4]  }
 0x4b1   : > { %p1551_p13 = pnand %p1550_p7, %p1835_p12  ;;  %s1553_s7 = sshll.u32 %s1674_s11, 4  ;;  %s1554_s7 = int_to_ptr.vmem [resolvable:$false] %s1553_s7 }
 0x4b2   : > { %s1555_s24 = scalar_lea.vmem %s1554_s7, 256  ;;  %p1556_p3 = scmp.lt.s32.totalorder %s1111_s3, %s1554_s7 }
 0x4b3   : > { %s1108_s22 = scalar_lea.hbm %s2097_s4, %s1342_s13  ;;  %p1552_p11 = pneg %p1551_p13 }
 0x4b4   : > { %p1557_p0 = scmp.lt.s32.totalorder %s1555_s24, %s1549_s6 }
 0x4b6   : > { %p1558_p1 = por %p1557_p0, %p1556_p3 }
 0x4b8   : > { %p1559_p4 = pnand %p1558_p1, %p1552_p11 }
 0x4ba   : > { %1562 = shalt.err (!%p1559_p4)
}
 0x4bb   : > { %s1563_s23 = scalar_lea.hbm %s1108_s22, 128  ;;  %s1567_s12 = scalar_lea.hbm %s2097_s4, 1024 }
 0x4bc   : > { %p1564_p2 = scmp.ne.s32.totalorder %s1108_s22, %s1563_s23  ;;  %p1568_p8 = scmp.lt.s32.totalorder %s1108_s22, %s2097_s4 }
 0x4bd   : > { %p1569_p9 = scmp.lt.s32.totalorder %s1567_s12, %s1563_s23 }
 0x4be   : > { %p1565_p5 = pnand %p1564_p2, %p1835_p12 }
 0x4bf   : > { %p1570_p10 = por %p1569_p9, %p1568_p8 }
 0x4c0   : > { %p1566_p6 = pneg %p1565_p5 }
 0x4c2   : > { %p1571_p7 = pnand %p1570_p10, %p1566_p6 }
 0x4c4   : > { %1574 = shalt.err (!%p1571_p7)
}
 0x4c5   : > { %1418 = dma.vmem_to_hbm [thread:$0]  (%p1835_p12), %s1111_s3, 128, %s1108_s22, %s1080_s5  }
 0x4c6 PF: > { %s2099_s6 = sld [smem:[#allocation8_spill]]  ;;  %p1428_p13 = scmp.ge.s32.totalorder %s1669_s27, 2 }
 0x4c7   : > { %p2100_p11 = scmp.ne.s32.totalorder %s2079_s10, 0 }
 0x4c9   : > { %p1422_p3 = pnand %p1428_p13, %p2100_p11 }
 0x4cb   : > { %p1423_p0 = pneg %p1422_p3 }
 0x4cc   : > { %s1122_s7 = sand.u32 1, %s2099_s6  }
 0x4cd   : > { %s1123_s1 = scalar_lea.sflag [#allocation3], %s1122_s7 }
 0x4ce   : > { %1620 = dma.done.wait (%p1423_p0), %s1123_s1, 128  }
 0x4cf   : > { %1622 = vsyncadd (%p1423_p0), %s1123_s1, 4294967168  ;;  %s1131_s28 = sand.u32 1, %s1629_s17   ;;  %p2101_p1 = scmp.ne.s32.totalorder %s2082_s9, 0 }
 0x4d0   : > { %s1132_s15 = scalar_lea.sflag [#allocation5], %s1131_s28 }
 0x4d1   : > { %p1425_p4 = pnand %p1428_p13, %p2101_p1 }
 0x4d3   : > { %p1426_p2 = pneg %p1425_p4 }
 0x4d5   : > { %1624 = dma.done.wait (%p1426_p2), %s1132_s15, 128  }
 0x4d6   : > { %1626 = vsyncadd (%p1426_p2), %s1132_s15, 4294967168  ;;  %s28_s27 = sadd.s32 1, %s1669_s27   ;;  %s2102_s5 = sld [smem:[#allocation9_spill]] }
 0x4d7   : > { %p25_p12 = scmp.ge.s32.totalorder %s28_s27, 10   ;;  %s2103_s22 = sld [smem:[#allocation15_spill]] }
 0x4d8   : > { %s2104_s23 = sld [smem:[#allocation10_spill]]  ;;  %s2108_s17 = smov %s1633_s18 }
 0x4d9   : > { %s2105_s24 = sld [smem:[#allocation11_spill]]  ;;  %s2109_s18 = smov %s1637_s19 }
 0x4da   : > { %s2106_s10 = sld [smem:[#allocation12_spill]]  ;;  %s2110_s19 = smov %s1843_s25 }
 0x4db   : > { %s2107_s26 = sld [smem:[#allocation14_spill]]  ;;  %s2111_s20 = smov %s1645_s21 }
 0x4dc   : > { %s2112_s21 = smov %s2102_s5  ;;  %27 = sbr.rel (!%p25_p12) target bundleno = 21 (0x15), region = 144 }
 0x4e0   : > { %s2113_s25 = smov %s2106_s10 }
 0x4e1   :  { %1137 = vsyncpa [#allocation3], 1 }
 0x4e2   :  { %1139 = vsyncpa [#allocation3 + $0x1], 1 }
 0x4e3   :  { %1140 = vsyncpa [#allocation5], 1 }
 0x4e4   :  { %1142 = vsyncpa [#allocation5 + $0x1], 1 }

</bundles_post_ra>
